<compile_context>
chip_gen: v7x
topology: tpu7x:2x2x1
jax: 0.10.0
libtpu: 0.0.40
codegen_flags: <defaults>
</compile_context>

<pallas_src>
import functools
import numpy as np
import jax
import jax.numpy as jnp
from jax.experimental import pallas as pl
from jax.experimental.pallas import tpu as pltpu


# --------------------------------------------------------------------------
# Kernel 1: sem/com 1x1-conv adapters + fused global-sum pooling of
#           bev / sem_a / com_a.       grid = (batch, row_tile)
# --------------------------------------------------------------------------
def _stream_adapter_kernel(bev_ref, sem_ref, com_ref,
                           wsem_ref, bsem_ref, wcom_ref, bcom_ref,
                           sem_out_ref, com_out_ref, pool_ref):
    t = pl.program_id(1)
    sem_a = jnp.dot(sem_ref[0].astype(jnp.bfloat16), wsem_ref[...],
                    preferred_element_type=jnp.float32) + bsem_ref[...]
    com_a = jnp.dot(com_ref[0].astype(jnp.bfloat16), wcom_ref[...],
                    preferred_element_type=jnp.float32) + bcom_ref[...]
    sem_out_ref[...] = sem_a[None]
    com_out_ref[...] = com_a[None]

    pools = jnp.concatenate(
        [jnp.sum(bev_ref[0], axis=0, keepdims=True),
         jnp.sum(sem_a, axis=0, keepdims=True),
         jnp.sum(com_a, axis=0, keepdims=True)], axis=0)[None]     # (1, 3, C)

    @pl.when(t == 0)
    def _init():
        pool_ref[...] = jnp.zeros_like(pool_ref)

    pool_ref[...] += pools


def stream_adapters(bev_f, sem_f, com_f, wsem, bsem, wcom, bcom, tile_rows):
    B, N, C = bev_f.shape
    Ch = sem_f.shape[-1]
    T = N // tile_rows
    return pl.pallas_call(
        _stream_adapter_kernel,
        grid=(B, T),
        in_specs=[
            pl.BlockSpec((1, tile_rows, C), lambda b, t: (b, t, 0)),
            pl.BlockSpec((1, tile_rows, Ch), lambda b, t: (b, t, 0)),
            pl.BlockSpec((1, tile_rows, Ch), lambda b, t: (b, t, 0)),
            pl.BlockSpec((Ch, C), lambda b, t: (0, 0)),
            pl.BlockSpec((1, C), lambda b, t: (0, 0)),
            pl.BlockSpec((Ch, C), lambda b, t: (0, 0)),
            pl.BlockSpec((1, C), lambda b, t: (0, 0)),
        ],
        out_specs=(
            pl.BlockSpec((1, tile_rows, C), lambda b, t: (b, t, 0)),
            pl.BlockSpec((1, tile_rows, C), lambda b, t: (b, t, 0)),
            pl.BlockSpec((1, 3, C), lambda b, t: (b, 0, 0)),
        ),
        out_shape=(
            jax.ShapeDtypeStruct((B, N, C), jnp.float32),   # sem_a
            jax.ShapeDtypeStruct((B, N, C), jnp.float32),   # com_a
            jax.ShapeDtypeStruct((B, 3, C), jnp.float32),   # pooled sums
        ),
        compiler_params=pltpu.CompilerParams(
            dimension_semantics=("parallel", "arbitrary")),
    )(bev_f, sem_f, com_f, wsem, bsem, wcom, bcom)


# --------------------------------------------------------------------------
# Kernel 2: fused img adapter.
#   x (Hi, Wi*C) --ah_pad--> yh (Ho+2, Wi*C)          (H-interp + H zero-pad)
#   conv+W-interp+W-pad+BN-scale folded into G[dy] (Wi*C, Wo*C):
#       conv = sum_dy  yh[dy:dy+Ho] @ G[dy]
#   + BN shift, ReLU, block-diagonal 1x1 conv, fused pooled sum.
# --------------------------------------------------------------------------
def _img_adapter_kernel(x_ref, ahp_ref, g_ref, bsh_ref, w1b_ref, b1_ref,
                        psum_ref, out_ref, pool_ref):
    Ho, WoC = out_ref.shape[1], out_ref.shape[2]
    yh = jnp.dot(ahp_ref[...], x_ref[0].astype(jnp.bfloat16),
                 preferred_element_type=jnp.float32)            # (Ho+2, Wi*C)
    acc = jnp.zeros((Ho, WoC), jnp.float32)
    for dy in range(3):                                         # K = Wi*C
        acc = acc + jnp.dot(yh[dy:dy + Ho, :].astype(jnp.bfloat16), g_ref[dy],
                            preferred_element_type=jnp.float32)
    y = jnp.maximum(acc + bsh_ref[...], 0.0)                    # folded BN + ReLU
    z = jnp.dot(y.astype(jnp.bfloat16), w1b_ref[...],
                preferred_element_type=jnp.float32) + b1_ref[...]
    out_ref[...] = z[None]                                      # lane-dense store
    pool_ref[...] = jnp.dot(jnp.sum(z, axis=0, keepdims=True), psum_ref[...],
                            preferred_element_type=jnp.float32)[None]


def img_adapter(img_f, ahp, g, bsh, w1b, b1, psum, Ho, WoC, C):
    B, Hi, WiC = img_f.shape
    return pl.pallas_call(
        _img_adapter_kernel,
        grid=(B,),
        in_specs=[
            pl.BlockSpec((1, Hi, WiC), lambda b: (b, 0, 0)),
            pl.BlockSpec(ahp.shape, lambda b: (0, 0)),
            pl.BlockSpec(g.shape, lambda b: (0, 0, 0)),
            pl.BlockSpec(bsh.shape, lambda b: (0, 0)),
            pl.BlockSpec(w1b.shape, lambda b: (0, 0)),
            pl.BlockSpec(b1.shape, lambda b: (0, 0)),
            pl.BlockSpec(psum.shape, lambda b: (0, 0)),
        ],
        out_specs=(
            pl.BlockSpec((1, Ho, WoC), lambda b: (b, 0, 0)),
            pl.BlockSpec((1, 1, C), lambda b: (b, 0, 0)),
        ),
        out_shape=(
            jax.ShapeDtypeStruct((B, Ho, WoC), jnp.float32),    # img_a (flat)
            jax.ShapeDtypeStruct((B, 1, C), jnp.float32),       # pooled sum
        ),
        compiler_params=pltpu.CompilerParams(
            dimension_semantics=("parallel",)),
    )(img_f, ahp, g, bsh, w1b, b1, psum)


# --------------------------------------------------------------------------
# Kernel 3: channel attentions (sigmoid(pool/HW @ W + b), weights pre-tiled to
#           W*C lanes) + lane-dense weighted fusion.   grid = (batch, row_tile)
# --------------------------------------------------------------------------
def _attn_fuse_kernel(pool3_ref, pooli_ref, wat_ref, bat_ref,
                      bev_ref, sem_ref, com_ref, img_ref, out_ref, *, inv_hw):
    p3 = pool3_ref[0]                                   # (3, C)
    pi = pooli_ref[0]                                   # (1, C)

    def attn(p, s):
        logits = jnp.dot(p * inv_hw, wat_ref[s],
                         preferred_element_type=jnp.float32) + bat_ref[s]
        return jax.nn.sigmoid(logits)                   # (1, W*C), lane-tiled

    a_bev = attn(p3[0:1, :], 0)
    a_sem = attn(p3[1:2, :], 1)
    a_com = attn(p3[2:3, :], 2)
    a_img = attn(pi, 3)
    out_ref[...] = (bev_ref[...] * a_bev + sem_ref[...] * a_sem
                    + com_ref[...] * a_com + img_ref[...] * a_img)


def attn_fuse(pool3, pool_img, wat, bat, bev_hf, sem_hf, com_hf, img_hf,
              tile_h, inv_hw):
    B, H, WC = bev_hf.shape
    C = pool3.shape[-1]
    T = H // tile_h
    kernel = functools.partial(_attn_fuse_kernel, inv_hw=inv_hw)

    def feat_spec():
        return pl.BlockSpec((1, tile_h, WC), lambda b, t: (b, t, 0))

    return pl.pallas_call(
        kernel,
        grid=(B, T),
        in_specs=[
            pl.BlockSpec((1, 3, C), lambda b, t: (b, 0, 0)),
            pl.BlockSpec((1, 1, C), lambda b, t: (b, 0, 0)),
            pl.BlockSpec(wat.shape, lambda b, t: (0, 0, 0)),
            pl.BlockSpec(bat.shape, lambda b, t: (0, 0, 0)),
            feat_spec(), feat_spec(), feat_spec(), feat_spec(),
        ],
        out_specs=pl.BlockSpec((1, tile_h, WC), lambda b, t: (b, t, 0)),
        out_shape=jax.ShapeDtypeStruct((B, H, WC), jnp.float32),
        compiler_params=pltpu.CompilerParams(
            dimension_semantics=("parallel", "parallel")),
    )(pool3, pool_img, wat, bat, bev_hf, sem_hf, com_hf, img_hf)


# --------------------------------------------------------------------------
# Host-side helpers (constant folding; tiny XLA/numpy ops at the boundary).
# --------------------------------------------------------------------------
def _bilinear_matrix_np(n_in, n_out):
    if n_out == 1:
        src = np.zeros((1,), np.float64)
    else:
        src = np.arange(n_out, dtype=np.float64) * (n_in - 1) / (n_out - 1)
    lo = np.clip(np.floor(src).astype(np.int64), 0, n_in - 1)
    hi = np.clip(lo + 1, 0, n_in - 1)
    w = (src - lo).astype(np.float32)
    A = np.zeros((n_out, n_in), np.float32)
    A[np.arange(n_out), lo] += (1.0 - w)
    A[np.arange(n_out), hi] += w
    return A


def bev_fusion_forward(params, bev, sem, com, img):
    """bev:(B,H,W,C)  sem/com:(B,H,W,C//2)  img:(B,H/2,W/2,C)  -> (B,H,W,C)."""
    B, H, W, C = bev.shape
    N = H * W
    Hi, Wi = img.shape[1], img.shape[2]
    Ho, Wo = 2 * Hi, 2 * Wi

    # ---- lane/matmul-friendly flat views (free reshapes) ----
    bev_f = bev.reshape(B, N, C)
    sem_f = sem.reshape(B, N, C // 2)
    com_f = com.reshape(B, N, C // 2)
    img_f = img.reshape(B, Hi, Wi * C)

    # ---- kernel 1: adapters + pooled sums ----
    tile_rows = 128 if N % 128 == 0 else N
    sem_a, com_a, pool3 = stream_adapters(
        bev_f, sem_f, com_f,
        params['adapter_sem_w'].astype(jnp.bfloat16),
        params['adapter_sem_b'].reshape(1, C),
        params['adapter_com_w'].astype(jnp.bfloat16),
        params['adapter_com_b'].reshape(1, C),
        tile_rows)

    # ---- kernel 2: fold upsample / zero-pad / conv3x3 / BN into operands ----
    ah = _bilinear_matrix_np(Hi, Ho)
    aw = _bilinear_matrix_np(Wi, Wo)
    ahp = np.zeros((Ho + 2, Hi), np.float32)
    ahp[1:Ho + 1] = ah                                        # H-interp + pad
    awp = np.zeros((Wo + 2, Wi), np.float32)
    awp[1:Wo + 1] = aw                                        # W-interp + pad
    S = np.stack([awp[dx:dx + Wo] for dx in range(3)], 0)     # (3, Wo, Wi)
    w3s = (params['adapter_img_conv3_w']
           * params['adapter_img_bn_scale'][None, None, None, :])   # (3,3,C,C)
    G = jnp.einsum('xwv,yxio->yviwo', jnp.asarray(S), w3s)
    G = G.reshape(3, Wi * C, Wo * C).astype(jnp.bfloat16)
    w1b = jnp.kron(jnp.eye(Wo, dtype=jnp.float32),
                   params['adapter_img_conv1_w']).astype(jnp.bfloat16)
    bsh = jnp.tile(params['adapter_img_bn_shift'], Wo).reshape(1, Wo * C)
    b1 = jnp.tile(params['adapter_img_conv1_b'], Wo).reshape(1, Wo * C)
    psum = jnp.asarray(np.kron(np.ones((Wo, 1), np.float32),
                               np.eye(C, dtype=np.float32)))  # (Wo*C, C)
    img_a, pool_img = img_adapter(
        img_f, jnp.asarray(ahp).astype(jnp.bfloat16), G, bsh, w1b, b1, psum,
        Ho, Wo * C, C)

    # ---- kernel 3: attentions (weights tiled to W*C lanes) + fusion ----
    wat = jnp.stack([jnp.tile(params[k], (1, W)) for k in
                     ('attn_bev_w', 'attn_sem_w', 'attn_com_w', 'attn_img_w')],
                    axis=0)                                   # (4, C, W*C)
    bat = jnp.stack([jnp.tile(params[k], W).reshape(1, W * C) for k in
                     ('attn_bev_b', 'attn_sem_b', 'attn_com_b', 'attn_img_b')],
                    axis=0)                                   # (4, 1, W*C)
    tile_h = 8 if H % 8 == 0 else H
    bev_hf = bev.reshape(B, H, W * C)
    sem_hf = sem_a.reshape(B, H, W * C)
    com_hf = com_a.reshape(B, H, W * C)
    out = attn_fuse(pool3, pool_img, wat, bat,
                    bev_hf, sem_hf, com_hf, img_a, tile_h, 1.0 / N)
    return out.reshape(B, H, W, C)


# --------------------------------------------------------------------------
# Deterministic parameter init (synthetic; shapes follow the PyTorch module).
# 1x1 conv weights stored (Cin, Cout); 3x3 conv stored HWIO (3,3,Cin,Cout).
# --------------------------------------------------------------------------
def init_params(key, C):
    ks = jax.random.split(key, 24)

    def nrm(k, shape, s=0.1):
        return (s * jax.random.normal(k, shape)).astype(jnp.float32)

    p = {}
    p['adapter_sem_w'] = nrm(ks[0], (C // 2, C))
    p['adapter_sem_b'] = nrm(ks[1], (C,))
    p['adapter_com_w'] = nrm(ks[2], (C // 2, C))
    p['adapter_com_b'] = nrm(ks[3], (C,))
    p['adapter_img_conv3_w'] = nrm(ks[4], (3, 3, C, C))
    gamma = 1.0 + nrm(ks[5], (C,))
    beta = nrm(ks[6], (C,))
    rmean = nrm(ks[7], (C,))
    rvar = 1.0 + jnp.abs(nrm(ks[8], (C,)))
    scale = gamma / jnp.sqrt(rvar + 1e-5)            # folded eval-mode BN
    p['adapter_img_bn_scale'] = scale.astype(jnp.float32)
    p['adapter_img_bn_shift'] = (beta - rmean * scale).astype(jnp.float32)
    p['adapter_img_conv1_w'] = nrm(ks[9], (C, C))
    p['adapter_img_conv1_b'] = nrm(ks[10], (C,))
    p['attn_bev_w'] = nrm(ks[11], (C, C))
    p['attn_bev_b'] = nrm(ks[12], (C,))
    p['attn_sem_w'] = nrm(ks[13], (C, C))
    p['attn_sem_b'] = nrm(ks[14], (C,))
    p['attn_com_w'] = nrm(ks[15], (C, C))
    p['attn_com_b'] = nrm(ks[16], (C,))
    p['attn_img_w'] = nrm(ks[17], (C, C))
    p['attn_img_b'] = nrm(ks[18], (C,))
    return p


# --------------------------------------------------------------------------
# Pure-JAX reference (clean f32 math) for the correctness check.
# --------------------------------------------------------------------------
def reference_forward(p, bev, sem, com, img, ah, aw):
    def c1(x, w, b):
        return jnp.einsum('bhwi,io->bhwo', x, w) + b.reshape(1, 1, 1, -1)

    sem_a = c1(sem, p['adapter_sem_w'], p['adapter_sem_b'])
    com_a = c1(com, p['adapter_com_w'], p['adapter_com_b'])

    up = jnp.einsum('oh,bhwc->bowc', ah, img)
    up = jnp.einsum('pw,bowc->bopc', aw, up)
    B, H, W, C = up.shape
    xp = jnp.pad(up, ((0, 0), (1, 1), (1, 1), (0, 0)))
    acc = jnp.zeros((B, H, W, C), jnp.float32)
    for dy in range(3):
        for dx in range(3):
            acc = acc + jnp.einsum('bhwi,io->bhwo',
                                   xp[:, dy:dy + H, dx:dx + W, :],
                                   p['adapter_img_conv3_w'][dy, dx])
    y = jnp.maximum(acc * p['adapter_img_bn_scale']
                    + p['adapter_img_bn_shift'], 0.0)
    img_a = c1(y, p['adapter_img_conv1_w'], p['adapter_img_conv1_b'])

    def attn(x, w, b):
        g = jnp.mean(x, axis=(1, 2))
        return jax.nn.sigmoid(g @ w + b)[:, None, None, :]

    ab = attn(bev, p['attn_bev_w'], p['attn_bev_b'])
    asm = attn(sem_a, p['attn_sem_w'], p['attn_sem_b'])
    ac = attn(com_a, p['attn_com_w'], p['attn_com_b'])
    ai = attn(img_a, p['attn_img_w'], p['attn_img_b'])
    return bev * ab + sem_a * asm + com_a * ac + img_a * ai


if __name__ == "__main__":
    C = 16          # channel
    B = 2
    H = W = 16      # BEV spatial size; img features come in at H/2 x W/2

    key = jax.random.PRNGKey(0)
    k_in, k_par = jax.random.split(key)
    kb, ks, kc, ki = jax.random.split(k_in, 4)

    # PyTorch-style NCHW inputs (moved to NHWC for the kernels).
    bev_nchw = jax.random.normal(kb, (B, C, H, W), jnp.float32)
    sem_nchw = jax.random.normal(ks, (B, C // 2, H, W), jnp.float32)
    com_nchw = jax.random.normal(kc, (B, C // 2, H, W), jnp.float32)
    img_nchw = jax.random.normal(ki, (B, C, H // 2, W // 2), jnp.float32)

    to_nhwc = lambda x: jnp.transpose(x, (0, 2, 3, 1))
    bev, sem, com, img = map(to_nhwc, (bev_nchw, sem_nchw, com_nchw, img_nchw))

    params = init_params(k_par, C)

    out_nhwc = bev_fusion_forward(params, bev, sem, com, img)
    out_nchw = jnp.transpose(out_nhwc, (0, 3, 1, 2))   # back to PyTorch layout
    jax.block_until_ready(out_nchw)

    # sanity check against pure-JAX f32 reference (kernel uses bf16 MXU
    # operands with f32 accumulation -> slightly looser tolerance).
    ah = jnp.asarray(_bilinear_matrix_np(H // 2, H))
    aw = jnp.asarray(_bilinear_matrix_np(W // 2, W))
    ref = reference_forward(params, bev, sem, com, img, ah, aw)
    np.testing.assert_allclose(np.asarray(out_nhwc), np.asarray(ref),
                               rtol=2e-2, atol=2e-2)

    print("KERNEL_OK")
</pallas_src>

<mosaic_0001>
module attributes {stable_mosaic.version = 11 : i64} {
  func.func @_stream_adapter_kernel(%arg0: i32, %arg1: i32, %arg2: memref<1x128x16xf32, #tpu.memory_space<vmem>>, %arg3: memref<1x128x8xf32, #tpu.memory_space<vmem>>, %arg4: memref<1x128x8xf32, #tpu.memory_space<vmem>>, %arg5: memref<8x16xbf16, #tpu.memory_space<vmem>>, %arg6: memref<1x16xf32, #tpu.memory_space<vmem>>, %arg7: memref<8x16xbf16, #tpu.memory_space<vmem>>, %arg8: memref<1x16xf32, #tpu.memory_space<vmem>>, %arg9: memref<1x128x16xf32, #tpu.memory_space<vmem>>, %arg10: memref<1x128x16xf32, #tpu.memory_space<vmem>>, %arg11: memref<1x3x16xf32, #tpu.memory_space<vmem>>) attributes {dimension_semantics = [#tpu.dimension_semantics<parallel>, #tpu.dimension_semantics<arbitrary>], iteration_bounds = array<i64: 2, 2>, scalar_prefetch = 0 : i64, scratch_operands = 0 : i64, tpu.core_type = #tpu.core_type<tc>, window_params = [{transform_indices = @transform_0, window_bounds = array<i64: 1, 128, 16>}, {transform_indices = @transform_1, window_bounds = array<i64: 1, 128, 8>}, {transform_indices = @transform_2, window_bounds = array<i64: 1, 128, 8>}, {pipeline_mode = #tpu.pipeline_mode<synchronous>, transform_indices = @transform_3, window_bounds = array<i64: 8, 16>}, {pipeline_mode = #tpu.pipeline_mode<synchronous>, transform_indices = @transform_4, window_bounds = array<i64: 1, 16>}, {pipeline_mode = #tpu.pipeline_mode<synchronous>, transform_indices = @transform_5, window_bounds = array<i64: 8, 16>}, {pipeline_mode = #tpu.pipeline_mode<synchronous>, transform_indices = @transform_6, window_bounds = array<i64: 1, 16>}, {transform_indices = @transform_7, window_bounds = array<i64: 1, 128, 16>}, {transform_indices = @transform_8, window_bounds = array<i64: 1, 128, 16>}, {transform_indices = @transform_9, window_bounds = array<i64: 1, 3, 16>}]} {
    %c0 = arith.constant 0 : index
    %c0_0 = arith.constant 0 : index
    %c0_1 = arith.constant 0 : index
    %0 = vector.load %arg3[%c0, %c0_0, %c0_1] : memref<1x128x8xf32, #tpu.memory_space<vmem>>, vector<1x128x8xf32>
    %1 = vector.shape_cast %0 : vector<1x128x8xf32> to vector<128x8xf32>
    %2 = arith.truncf %1 : vector<128x8xf32> to vector<128x8xbf16>
    %c0_2 = arith.constant 0 : index
    %c0_3 = arith.constant 0 : index
    %3 = vector.load %arg5[%c0_2, %c0_3] : memref<8x16xbf16, #tpu.memory_space<vmem>>, vector<8x16xbf16>
    %cst = arith.constant dense<0.000000e+00> : vector<128x16xf32>
    %4 = tpu.matmul %2, %3, %cst {dimension_numbers = #tpu.dot_dimension_numbers<[1], [0], [0], [1], [0, 0, 1, 1], [], []>} : vector<128x8xbf16>, vector<8x16xbf16>, vector<128x16xf32> -> vector<128x16xf32>
    %c0_4 = arith.constant 0 : index
    %c0_5 = arith.constant 0 : index
    %5 = vector.load %arg6[%c0_4, %c0_5] : memref<1x16xf32, #tpu.memory_space<vmem>>, vector<1x16xf32>
    %6 = vector.broadcast %5 : vector<1x16xf32> to vector<128x16xf32>
    %7 = arith.addf %4, %6 : vector<128x16xf32>
    %c0_6 = arith.constant 0 : index
    %c0_7 = arith.constant 0 : index
    %c0_8 = arith.constant 0 : index
    %8 = vector.load %arg4[%c0_6, %c0_7, %c0_8] : memref<1x128x8xf32, #tpu.memory_space<vmem>>, vector<1x128x8xf32>
    %9 = vector.shape_cast %8 : vector<1x128x8xf32> to vector<128x8xf32>
    %10 = arith.truncf %9 : vector<128x8xf32> to vector<128x8xbf16>
    %c0_9 = arith.constant 0 : index
    %c0_10 = arith.constant 0 : index
    %11 = vector.load %arg7[%c0_9, %c0_10] : memref<8x16xbf16, #tpu.memory_space<vmem>>, vector<8x16xbf16>
    %cst_11 = arith.constant dense<0.000000e+00> : vector<128x16xf32>
    %12 = tpu.matmul %10, %11, %cst_11 {dimension_numbers = #tpu.dot_dimension_numbers<[1], [0], [0], [1], [0, 0, 1, 1], [], []>} : vector<128x8xbf16>, vector<8x16xbf16>, vector<128x16xf32> -> vector<128x16xf32>
    %c0_12 = arith.constant 0 : index
    %c0_13 = arith.constant 0 : index
    %13 = vector.load %arg8[%c0_12, %c0_13] : memref<1x16xf32, #tpu.memory_space<vmem>>, vector<1x16xf32>
    %14 = vector.broadcast %13 : vector<1x16xf32> to vector<128x16xf32>
    %15 = arith.addf %12, %14 : vector<128x16xf32>
    %16 = vector.shape_cast %7 : vector<128x16xf32> to vector<1x128x16xf32>
    %c0_14 = arith.constant 0 : index
    %c0_15 = arith.constant 0 : index
    %c0_16 = arith.constant 0 : index
    %17 = vector.load %arg9[%c0_14, %c0_15, %c0_16] : memref<1x128x16xf32, #tpu.memory_space<vmem>>, vector<1x128x16xf32>
    tpu.vector_store %arg9[%c0_14, %c0_15, %c0_16], %16 {strides = array<i32>} : memref<1x128x16xf32, #tpu.memory_space<vmem>>, vector<1x128x16xf32>,
    %18 = vector.shape_cast %15 : vector<128x16xf32> to vector<1x128x16xf32>
    %c0_17 = arith.constant 0 : index
    %c0_18 = arith.constant 0 : index
    %c0_19 = arith.constant 0 : index
    %19 = vector.load %arg10[%c0_17, %c0_18, %c0_19] : memref<1x128x16xf32, #tpu.memory_space<vmem>>, vector<1x128x16xf32>
    tpu.vector_store %arg10[%c0_17, %c0_18, %c0_19], %18 {strides = array<i32>} : memref<1x128x16xf32, #tpu.memory_space<vmem>>, vector<1x128x16xf32>,
    %c0_20 = arith.constant 0 : index
    %c0_21 = arith.constant 0 : index
    %c0_22 = arith.constant 0 : index
    %20 = vector.load %arg2[%c0_20, %c0_21, %c0_22] : memref<1x128x16xf32, #tpu.memory_space<vmem>>, vector<1x128x16xf32>
    %21 = vector.shape_cast %20 : vector<1x128x16xf32> to vector<128x16xf32>
    %cst_23 = arith.constant dense<0.000000e+00> : vector<16xf32>
    %22 = vector.multi_reduction <add>, %21, %cst_23 [0] : vector<128x16xf32> to vector<16xf32>
    %23 = vector.shape_cast %22 : vector<16xf32> to vector<1x16xf32>
    %cst_24 = arith.constant dense<0.000000e+00> : vector<16xf32>
    %24 = vector.multi_reduction <add>, %7, %cst_24 [0] : vector<128x16xf32> to vector<16xf32>
    %25 = vector.shape_cast %24 : vector<16xf32> to vector<1x16xf32>
    %cst_25 = arith.constant dense<0.000000e+00> : vector<16xf32>
    %26 = vector.multi_reduction <add>, %15, %cst_25 [0] : vector<128x16xf32> to vector<16xf32>
    %27 = vector.shape_cast %26 : vector<16xf32> to vector<1x16xf32>
    %28 = tpu.concatenate %23, %25, %27 in 0 : vector<1x16xf32>, vector<1x16xf32>, vector<1x16xf32> -> vector<3x16xf32>
    %29 = vector.shape_cast %28 : vector<3x16xf32> to vector<1x3x16xf32>
    %c0_i32 = arith.constant 0 : i32
    %30 = arith.cmpi eq, %arg1, %c0_i32 : i32
    %31 = arith.extui %30 : i1 to i32
    %c0_i32_26 = arith.constant 0 : i32
    %32 = arith.cmpi ne, %31, %c0_i32_26 : i32
    scf.if %32 {
      %cst_33 = arith.constant 0.000000e+00 : f32
      %36 = vector.broadcast %cst_33 : f32 to vector<1x3x16xf32>
      %c0_34 = arith.constant 0 : index
      %c0_35 = arith.constant 0 : index
      %c0_36 = arith.constant 0 : index
      %37 = vector.load %arg11[%c0_34, %c0_35, %c0_36] : memref<1x3x16xf32, #tpu.memory_space<vmem>>, vector<1x3x16xf32>
      tpu.vector_store %arg11[%c0_34, %c0_35, %c0_36], %36 {strides = array<i32>} : memref<1x3x16xf32, #tpu.memory_space<vmem>>, vector<1x3x16xf32>,
    } else {
    }
    %c0_27 = arith.constant 0 : index
    %c0_28 = arith.constant 0 : index
    %c0_29 = arith.constant 0 : index
    %33 = vector.load %arg11[%c0_27, %c0_28, %c0_29] : memref<1x3x16xf32, #tpu.memory_space<vmem>>, vector<1x3x16xf32>
    %34 = arith.addf %33, %29 : vector<1x3x16xf32>
    %c0_30 = arith.constant 0 : index
    %c0_31 = arith.constant 0 : index
    %c0_32 = arith.constant 0 : index
    %35 = vector.load %arg11[%c0_30, %c0_31, %c0_32] : memref<1x3x16xf32, #tpu.memory_space<vmem>>, vector<1x3x16xf32>
    tpu.vector_store %arg11[%c0_30, %c0_31, %c0_32], %34 {strides = array<i32>} : memref<1x3x16xf32, #tpu.memory_space<vmem>>, vector<1x3x16xf32>,
    return
  }
  func.func @transform_0(%arg0: i32, %arg1: i32) -> (i32, i32, i32) {
    %c0_i32 = arith.constant 0 : i32
    %c0_i32_0 = arith.constant 0 : i32
    return %arg0, %arg1, %c0_i32 : i32, i32, i32
  }
  func.func @transform_1(%arg0: i32, %arg1: i32) -> (i32, i32, i32) {
    %c0_i32 = arith.constant 0 : i32
    %c0_i32_0 = arith.constant 0 : i32
    return %arg0, %arg1, %c0_i32 : i32, i32, i32
  }
  func.func @transform_2(%arg0: i32, %arg1: i32) -> (i32, i32, i32) {
    %c0_i32 = arith.constant 0 : i32
    %c0_i32_0 = arith.constant 0 : i32
    return %arg0, %arg1, %c0_i32 : i32, i32, i32
  }
  func.func @transform_3(%arg0: i32, %arg1: i32) -> (i32, i32) {
    %c0_i32 = arith.constant 0 : i32
    %c0_i32_0 = arith.constant 0 : i32
    %c0_i32_1 = arith.constant 0 : i32
    return %c0_i32, %c0_i32_0 : i32, i32
  }
  func.func @transform_4(%arg0: i32, %arg1: i32) -> (i32, i32) {
    %c0_i32 = arith.constant 0 : i32
    %c0_i32_0 = arith.constant 0 : i32
    %c0_i32_1 = arith.constant 0 : i32
    return %c0_i32, %c0_i32_0 : i32, i32
  }
  func.func @transform_5(%arg0: i32, %arg1: i32) -> (i32, i32) {
    %c0_i32 = arith.constant 0 : i32
    %c0_i32_0 = arith.constant 0 : i32
    %c0_i32_1 = arith.constant 0 : i32
    return %c0_i32, %c0_i32_0 : i32, i32
  }
  func.func @transform_6(%arg0: i32, %arg1: i32) -> (i32, i32) {
    %c0_i32 = arith.constant 0 : i32
    %c0_i32_0 = arith.constant 0 : i32
    %c0_i32_1 = arith.constant 0 : i32
    return %c0_i32, %c0_i32_0 : i32, i32
  }
  func.func @transform_7(%arg0: i32, %arg1: i32) -> (i32, i32, i32) {
    %c0_i32 = arith.constant 0 : i32
    %c0_i32_0 = arith.constant 0 : i32
    return %arg0, %arg1, %c0_i32 : i32, i32, i32
  }
  func.func @transform_8(%arg0: i32, %arg1: i32) -> (i32, i32, i32) {
    %c0_i32 = arith.constant 0 : i32
    %c0_i32_0 = arith.constant 0 : i32
    return %arg0, %arg1, %c0_i32 : i32, i32, i32
  }
  func.func @transform_9(%arg0: i32, %arg1: i32) -> (i32, i32, i32) {
    %c0_i32 = arith.constant 0 : i32
    %c0_i32_0 = arith.constant 0 : i32
    %c0_i32_1 = arith.constant 0 : i32
    return %arg0, %c0_i32, %c0_i32_0 : i32, i32, i32
  }
}

</mosaic_0001>

<bundles_post_ra>
// kernel: tpu_custom_call.1
= control target key start
LH: loop header
LB: loop body
LE: loop exit
PB: predicated region body
PF: predicated region fallthrough
CT: control target
= control target key end

     0   :  { %s1404_s30 = smov 0   ;;  %s1406_s10 = smov 0   ;;  %s1717_s0 = inlined_call_operand.vmem [shape: f32[2,256,16], index: 0, kind: input, shape index: {}]   ;;  %s1718_s1 = inlined_call_operand.vmem [shape: f32[2,256,8], index: 1, kind: input, shape index: {}]   ;;  %s1719_s2 = inlined_call_operand.vmem [shape: f32[2,256,8], index: 2, kind: input, shape index: {}]   ;;  %s1720_s3 = inlined_call_operand.vmem [shape: bf16[8,16], index: 3, kind: input, shape index: {}]   ;;  %s1721_s4 = inlined_call_operand.vmem [shape: f32[1,16], index: 4, kind: input, shape index: {}]   ;;  %s1722_s5 = inlined_call_operand.vmem [shape: bf16[8,16], index: 5, kind: input, shape index: {}]   ;;  %s1723_s6 = inlined_call_operand.vmem [shape: f32[1,16], index: 6, kind: input, shape index: {}]   ;;  %s1724_s7 = inlined_call_operand.vmem [shape: f32[2,256,16], index: 7, kind: output, shape index: {0}]   ;;  %s1725_s8 = inlined_call_operand.vmem [shape: f32[2,256,16], index: 8, kind: output, shape index: {1}]   ;;  %s1726_s9 = inlined_call_operand.vmem [shape: f32[2,3,16], index: 9, kind: output, shape index: {2}]  }
   0x1   :  { %s1408_s11 = smov 0   ;;  %s1410_s12 = smov 0  }
   0x2   :  { %s1412_s13 = smov 0  }
   0x3 LB: > { %s29_s14 = sadd.s32 1, %s1343_s11  ;;  %s32_s15 = sadd.s32 1, %s1347_s12  ;;  %s1351_s13 = sphi %s1412_s13, %s20_s13   ;;  %s1347_s12 = sphi %s1410_s12, %s1730_s12   ;;  %s1343_s11 = sphi %s1408_s11, %s1729_s11   ;;  %s1339_s10 = sphi %s1406_s10, %s1728_s10   ;;  %s1335_s30 = sphi %s1404_s30, %s1727_s30  }
   0x4   : > { %p30_p0 = scmp.ge.s32.totalorder %s29_s14, 2  ;;  %p1178_p1 = scmp.ge.s32.totalorder %s1351_s13, 1 }
   0x5   : > { %p349_p2 = scmp.lt.s32.totalorder %s1351_s13, 5 }
   0x6   : > { %s1732_s14 = smov (%p30_p0, %s29_s14), 0  ;;  %s1734_s15 = smov (!%p30_p0, %s32_s15), %s1347_s12 }
   0x7   : > { %p350_p3 = pnand %p1178_p1, %p349_p2  ;;  %p34_p4 = scmp.ge.s32.totalorder %s1734_s15, 2 }
   0x8   : > { %v503_v0 = vld [vmem:[%s1720_s3] sm:$0xf] (!%p350_p3)  ;;  %vm536_vm0 = vcmask (!%p350_p3), 1043456   ;;  %s1179_s20 = sshll.u32 (!%p350_p3), %s1335_s30, 4  ;;  %p425_p5 = scmp.lt.s32.totalorder (!%p350_p3), %s1339_s10, 1  ;;  %vm511_vm1 = vcmask (!%p350_p3), 64512  }
   0x9   : > { %s1736_s15 = smov (%p34_p4, %s1734_s15), 0  ;;  %353 = sbr.rel (%p350_p3) target bundleno = 291 (0x123), region = 48 }
   0xa   : > { %v661_v1 = vld [vmem:[%s1722_s5] sm:$0xf] (!%p350_p3)  ;;  %1270 = vmatprep.subr.msk.bf16.mxu0 (!%p350_p3), %vm536_vm0, %v503_v0  ;;  %v538_v2 = vsel (!%p350_p3), %vm536_vm0, %v503_v0, 0  ;;  %p427_p6 = scmp.lt.s32.totalorder (!%p350_p3), %s1179_s20, 31  ;;  %vm793_vm2 = vcmask (!%p350_p3), 130048   ;;  %vm953_vm3 = vcmask (!%p350_p3), 1040384  }
   0xb   : > { %1271 = vmatprep.subr.msk.bf16.mxu1 (!%p350_p3), %vm536_vm0, %v661_v1  ;;  %v694_v3 = vsel (!%p350_p3), %vm536_vm0, %v661_v1, 0  ;;  %1235 = vmatpush3.bf16.msra.mxu0 (!%p350_p3), %v538_v2  ;;  %vm955_vm4 = vcmask (!%p350_p3), 1041408   ;;  %p1213_p7 = scmp.ne.s32.totalorder (!%p350_p3), %s1335_s30, 0 }
   0xc   : > { %1253 = vmatpush3.bf16.msra.mxu1 (!%p350_p3), %v694_v3 }
  0x10   : > { %s1738_s10 = smov (!%p425_p5, %s1339_s10), 1  ;;  %s1740_s20 = smov (!%p427_p6, %s1179_s20), 31 }
  0x11   : > { %s1180_s21 = sshll.u32 %s1738_s10, 5  ;;  %s1194_s22 = sshll.u32 %s1738_s10, 2  ;;  %vm961_vm5 = vcmask (!%p1213_p7), 124928  }
  0x12   : > { %s430_s23 = sadd.s32 %s1180_s21, %s1740_s20  ;;  %s1446_s26 = scalar_lea.vmem %s1726_s9, %s1194_s22 }
  0x13   : > { %s1448_s27 = sshll.u32 %s430_s23, 3 }
  0x14   : > { %s1454_s16 = scalar_lea.vmem %s1718_s1, %s1448_s27  ;;  %s1462_s18 = scalar_lea.vmem %s1719_s2, %s1448_s27 }
  0x15   : > { %v479_v4 = vld [vmem:[%s1454_s16] sm:$0xff]  ;;  %v480_v5 = vld [vmem:[%s1454_s16 + $0x8] sm:$0xff]  ;;  %v481_v6 = vld [vmem:[%s1454_s16 + $0x10] sm:$0xff]  ;;  %s1514_s21 = scalar_lea.vmem %s1717_s0, %s1448_s27 }
  0x16   : > { %v495_v7 = vpack.c.bf16 %v480_v5, %v479_v4  ;;  %v637_v8 = vld [vmem:[%s1462_s18] sm:$0xff]  ;;  %v638_v9 = vld [vmem:[%s1462_s18 + $0x8] sm:$0xff]  ;;  %v482_v10 = vld [vmem:[%s1454_s16 + $0x18] sm:$0xff] }
  0x17   : > { %v653_v11 = vpack.c.bf16 %v638_v9, %v637_v8  ;;  %v496_v12 = vpack.c.bf16 %v482_v10, %v481_v6  ;;  %v639_v13 = vld [vmem:[%s1462_s18 + $0x10] sm:$0xff]  ;;  %v640_v14 = vld [vmem:[%s1462_s18 + $0x18] sm:$0xff]  ;;  %v483_v15 = vld [vmem:[%s1454_s16 + $0x20] sm:$0xff] }
  0x18   : > { %1236 = vmatprep.mubr.msk.bf16.mxu0 %vm511_vm1, %v495_v7  ;;  %v654_v16 = vpack.c.bf16 %v640_v14, %v639_v13  ;;  %v484_v17 = vld [vmem:[%s1454_s16 + $0x28] sm:$0xff]  ;;  %v641_v18 = vld [vmem:[%s1462_s18 + $0x20] sm:$0xff]  ;;  %v485_v22 = vld [vmem:[%s1454_s16 + $0x30] sm:$0xff] }
  0x19   : > { %v642_v19 = vld [vmem:[%s1462_s18 + $0x28] sm:$0xff]  ;;  %1254 = vmatprep.mubr.msk.bf16.mxu1 %vm511_vm1, %v653_v11  ;;  %1237 = vmatmul.mubr.msk.bf16.vlgmr.msra.gmra.mrb[0].mxu0 %vm511_vm1, %v496_v12  ;;  %v497_v20 = vpack.c.bf16 %v484_v17, %v483_v15  ;;  %v486_v23 = vld [vmem:[%s1454_s16 + $0x38] sm:$0xff]  ;;  %v643_v24 = vld [vmem:[%s1462_s18 + $0x30] sm:$0xff] }
  0x1a   : > { %v655_v21 = vpack.c.bf16 %v642_v19, %v641_v18  ;;  %1255 = vmatmul.mubr.msk.bf16.vlgmr.msra.gmra.mrb[0].mxu1 %vm511_vm1, %v654_v16  ;;  %v644_v25 = vld [vmem:[%s1462_s18 + $0x38] sm:$0xff]  ;;  %v487_v26 = vld [vmem:[%s1454_s16 + $0x40] sm:$0xff]  ;;  %v488_v27 = vld [vmem:[%s1454_s16 + $0x48] sm:$0xff]  ;;  %v498_v30 = vpack.c.bf16 %v486_v23, %v485_v22 }
  0x1b   : > { %1240 = vmatprep.mubr.msk.bf16.mxu0 %vm511_vm1, %v497_v20  ;;  %v645_v28 = vld [vmem:[%s1462_s18 + $0x40] sm:$0xff]  ;;  %v646_v29 = vld [vmem:[%s1462_s18 + $0x48] sm:$0xff]  ;;  %v656_v31 = vpack.c.bf16 %v644_v25, %v643_v24  ;;  %v499_v32 = vpack.c.bf16 %v488_v27, %v487_v26  ;;  %v489_v34 = vld [vmem:[%s1454_s16 + $0x50] sm:$0xff] }
  0x1c   : > { %1258 = vmatprep.mubr.msk.bf16.mxu1 %vm511_vm1, %v655_v21  ;;  %v657_v33 = vpack.c.bf16 %v646_v29, %v645_v28  ;;  %v490_v35 = vld [vmem:[%s1454_s16 + $0x58] sm:$0xff]  ;;  %v647_v36 = vld [vmem:[%s1462_s18 + $0x50] sm:$0xff]  ;;  %v491_v38 = vld [vmem:[%s1454_s16 + $0x60] sm:$0xff] }
  0x1d   : > { %v648_v37 = vld [vmem:[%s1462_s18 + $0x58] sm:$0xff]  ;;  %v492_v39 = vld [vmem:[%s1454_s16 + $0x68] sm:$0xff]  ;;  %v649_v40 = vld [vmem:[%s1462_s18 + $0x60] sm:$0xff]  ;;  %v500_v42 = vpack.c.bf16 %v490_v35, %v489_v34 }
  0x1e   : > { %v650_v41 = vld [vmem:[%s1462_s18 + $0x68] sm:$0xff]  ;;  %v658_v43 = vpack.c.bf16 %v648_v37, %v647_v36  ;;  %v501_v44 = vpack.c.bf16 %v492_v39, %v491_v38  ;;  %v493_v46 = vld [vmem:[%s1454_s16 + $0x70] sm:$0xff]  ;;  %v494_v47 = vld [vmem:[%s1454_s16 + $0x78] sm:$0xff]  ;;  %s1553_s16 = scalar_lea.vmem %s1724_s7, %s1448_s27 }
  0x1f   : > { %v659_v45 = vpack.c.bf16 %v650_v41, %v649_v40  ;;  %v651_v48 = vld [vmem:[%s1462_s18 + $0x70] sm:$0xff]  ;;  %v652_v49 = vld [vmem:[%s1462_s18 + $0x78] sm:$0xff]  ;;  %v502_v50 = vpack.c.bf16 %v494_v47, %v493_v46  ;;  %v826_v52 = vld [vmem:[%s1514_s21] sm:$0xff]  ;;  %s1560_s18 = scalar_lea.vmem %s1725_s8, %s1448_s27 }
  0x20   : > { %v660_v51 = vpack.c.bf16 %v652_v49, %v651_v48  ;;  %v827_v53 = vld [vmem:[%s1514_s21 + $0x8] sm:$0xff]  ;;  %v842_v54 = vsel %vm793_vm2, %v826_v52, 0.0  ;;  %v828_v56 = vld [vmem:[%s1514_s21 + $0x10] sm:$0xff]  ;;  %v829_v59 = vld [vmem:[%s1514_s21 + $0x18] sm:$0xff] }
  0x21   : > { %1241 = vmatmul.mubr.msk.bf16.gmra.mrb[4].mxu0 %vm511_vm1, %v498_v30  ;;  %v843_v55 = vsel %vm793_vm2, %v827_v53, 0.0  ;;  %v845_v58 = vsel %vm793_vm2, %v828_v56, 0.0  ;;  %v847_v61 = vsel %vm793_vm2, %v829_v59, 0.0  ;;  %v830_v62 = vld [vmem:[%s1514_s21 + $0x20] sm:$0xff]  ;;  %v831_v1 = vld [vmem:[%s1514_s21 + $0x28] sm:$0xff]  ;;  %v832_v4 = vld [vmem:[%s1514_s21 + $0x30] sm:$0xff] }
  0x22   : > { %1259 = vmatmul.mubr.msk.bf16.gmra.mrb[4].mxu1 %vm511_vm1, %v656_v31  ;;  %1244 = vmatprep.mubr.msk.bf16.mxu0 %vm511_vm1, %v499_v32  ;;  %v844_v57 = vadd.f32 %v843_v55, %v842_v54  ;;  %v849_v0 = vsel %vm793_vm2, %v830_v62, 0.0  ;;  %v851_v3 = vsel %vm793_vm2, %v831_v1, 0.0  ;;  %v853_v6 = vsel %vm793_vm2, %v832_v4, 0.0  ;;  %v833_v7 = vld [vmem:[%s1514_s21 + $0x38] sm:$0xff]  ;;  %v834_v10 = vld [vmem:[%s1514_s21 + $0x40] sm:$0xff]  ;;  %v835_v13 = vld [vmem:[%s1514_s21 + $0x48] sm:$0xff] }
  0x23   : > { %1262 = vmatprep.mubr.msk.bf16.mxu1 %vm511_vm1, %v657_v33  ;;  %v855_v9 = vsel %vm793_vm2, %v833_v7, 0.0  ;;  %v857_v12 = vsel %vm793_vm2, %v834_v10, 0.0  ;;  %v859_v15 = vsel %vm793_vm2, %v835_v13, 0.0  ;;  %v836_v16 = vld [vmem:[%s1514_s21 + $0x50] sm:$0xff]  ;;  %v1541_v19 = vld [vmem:[%s1721_s4] ss:$0 sm:$0xff] }
  0x24   : > { %v846_v60 = vadd.f32 %v845_v58, %v844_v57  ;;  %v861_v18 = vsel %vm793_vm2, %v836_v16, 0.0  ;;  %v837_v20 = vld [vmem:[%s1514_s21 + $0x58] sm:$0xff]  ;;  %v1547_v21 = vld [vmem:[%s1723_s6] ss:$0 sm:$0xff]  ;;  %v840_v7 = vld [vmem:[%s1514_s21 + $0x70] sm:$0xff] }
  0x25   : > { %v863_v27 = vsel %vm793_vm2, %v837_v20, 0.0  ;;  %v838_v32 = vld [vmem:[%s1514_s21 + $0x60] sm:$0xff]  ;;  %v869_v20 = vsel %vm793_vm2, %v840_v7, 0.0 }
  0x26   : > { %v848_v63 = vadd.f32 %v847_v61, %v846_v60 }
  0x28   : > { %v850_v2 = vadd.f32 %v849_v0, %v848_v63 }
  0x29   : > { %1245 = vmatmul.mubr.msk.bf16.gmra.mrb[8].mxu0 %vm511_vm1, %v500_v42  ;;  %v865_v42 = vsel %vm793_vm2, %v838_v32, 0.0 }
  0x2a   : > { %1263 = vmatmul.mubr.msk.bf16.gmra.mrb[8].mxu1 %vm511_vm1, %v658_v43  ;;  %1248 = vmatprep.mubr.msk.bf16.mxu0 %vm511_vm1, %v501_v44  ;;  %v852_v5 = vadd.f32 %v851_v3, %v850_v2 }
  0x2b   : > { %1266 = vmatprep.mubr.msk.bf16.mxu1 %vm511_vm1, %v659_v45  ;;  %v839_v45 = vld [vmem:[%s1514_s21 + $0x68] sm:$0xff] }
  0x2c   : > { %v854_v8 = vadd.f32 %v853_v6, %v852_v5  ;;  %v867_v58 = vsel %vm793_vm2, %v839_v45, 0.0 }
  0x2e   : > { %v856_v11 = vadd.f32 %v855_v9, %v854_v8 }
  0x30   : > { %v858_v14 = vadd.f32 %v857_v12, %v856_v11 }
  0x31   : > { %1249 = vmatmul.mubr.msk.bf16.gmra.mrb[12].mxu0 %vm511_vm1, %v502_v50 }
  0x32   : > { %1267 = vmatmul.mubr.msk.bf16.gmra.mrb[12].mxu1 %vm511_vm1, %v660_v51  ;;  %v860_v17 = vadd.f32 %v859_v15, %v858_v14  ;;  %v841_v15 = vld [vmem:[%s1514_s21 + $0x78] sm:$0xff] }
  0x34   : > { %v862_v23 = vadd.f32 %v861_v18, %v860_v17 }
  0x36   : > { %v864_v40 = vadd.f32 %v863_v27, %v862_v23 }
  0x38   : > { %v866_v52 = vadd.f32 %v865_v42, %v864_v40 }
  0x3a   : > { %v868_v16 = vadd.f32 %v867_v58, %v866_v52 }
  0x3c   : > { %v870_v32 = vadd.f32 %v869_v20, %v868_v16 }
  0xec   : > { %v1238_v22 = vpop.f32.mrb[0].mxu0 }
  0xed   : > { %v583_v24 = vadd.f32 %v1238_v22, %v1541_v19  ;;  %v1256_v25 = vpop.f32.mrb[0].mxu1  ;;  %v574_v26 = vpop.f32.mrb[1].mxu0 }
  0xee   : > { %v739_v28 = vadd.f32 %v1256_v25, %v1547_v21  ;;  %v575_v29 = vadd.f32 %v1541_v19, %v574_v26  ;;  %v730_v30 = vpop.f32.mrb[1].mxu1  ;;  %v1239_v31 = vpop.f32.mrb[2].mxu0  ;;  %v871_v26 = vsel %vm793_vm2, %v841_v15, 0.0 }
  0xef   : > { %796 = vst.msk [vmem:[%s1553_s16 + $0x10] sm:$0xff] %vm793_vm2, %v583_v24  ;;  %v731_v33 = vadd.f32 %v1547_v21, %v730_v30  ;;  %v586_v34 = vadd.f32 %v1239_v31, %v1541_v19  ;;  %v1257_v35 = vpop.f32.mrb[2].mxu1  ;;  %v577_v36 = vpop.f32.mrb[3].mxu0  ;;  %v882_v49 = vsel %vm793_vm2, %v583_v24, 0.0 }
  0xf0   : > { %812 = vst.msk [vmem:[%s1560_s18 + $0x10] sm:$0xff] %vm793_vm2, %v739_v28  ;;  %794 = vst.msk [vmem:[%s1553_s16] sm:$0xff] %vm793_vm2, %v575_v29  ;;  %v742_v37 = vadd.f32 %v1257_v35, %v1547_v21  ;;  %v578_v38 = vadd.f32 %v1541_v19, %v577_v36  ;;  %v733_v39 = vpop.f32.mrb[3].mxu1  ;;  %v879_v43 = vsel %vm793_vm2, %v575_v29, 0.0  ;;  %v919_v53 = vsel %vm793_vm2, %v739_v28, 0.0 }
  0xf1   : > { %810 = vst.msk [vmem:[%s1560_s18] sm:$0xff] %vm793_vm2, %v731_v33  ;;  %797 = vst.msk [vmem:[%s1553_s16 + $0x18] sm:$0xff] %vm793_vm2, %v586_v34  ;;  %v734_v41 = vadd.f32 %v1547_v21, %v733_v39  ;;  %v916_v46 = vsel %vm793_vm2, %v731_v33, 0.0  ;;  %v884_v59 = vsel %vm793_vm2, %v586_v34, 0.0 }
  0xf2   : > { %813 = vst.msk [vmem:[%s1560_s18 + $0x18] sm:$0xff] %vm793_vm2, %v742_v37  ;;  %795 = vst.msk [vmem:[%s1553_s16 + $0x8] sm:$0xff] %vm793_vm2, %v578_v38  ;;  %v880_v44 = vsel %vm793_vm2, %v578_v38, 0.0  ;;  %v921_v1 = vsel %vm793_vm2, %v742_v37, 0.0 }
  0xf3   : > { %v881_v47 = vadd.f32 %v880_v44, %v879_v43  ;;  %811 = vst.msk [vmem:[%s1560_s18 + $0x8] sm:$0xff] %vm793_vm2, %v734_v41  ;;  %v917_v48 = vsel %vm793_vm2, %v734_v41, 0.0 }
  0xf4   : > { %v918_v50 = vadd.f32 %v917_v48, %v916_v46  ;;  %v1242_v51 = vpop.f32.mrb[4].mxu0 }
  0xf5   : > { %v883_v54 = vadd.f32 %v882_v49, %v881_v47  ;;  %v599_v55 = vadd.f32 %v1242_v51, %v1541_v19  ;;  %v1260_v56 = vpop.f32.mrb[4].mxu1  ;;  %v590_v57 = vpop.f32.mrb[5].mxu0 }
  0xf6   : > { %v920_v60 = vadd.f32 %v919_v53, %v918_v50  ;;  %v755_v61 = vadd.f32 %v1260_v56, %v1547_v21  ;;  %v591_v62 = vadd.f32 %v1541_v19, %v590_v57  ;;  %v746_v63 = vpop.f32.mrb[5].mxu1  ;;  %v1243_v0 = vpop.f32.mrb[6].mxu0  ;;  %v872_v53 = vadd.f32 %v871_v26, %v870_v32 }
  0xf7   : > { %800 = vst.msk [vmem:[%s1553_s16 + $0x30] sm:$0xff] %vm793_vm2, %v599_v55  ;;  %v885_v2 = vadd.f32 %v884_v59, %v883_v54  ;;  %v747_v3 = vadd.f32 %v1547_v21, %v746_v63  ;;  %v602_v4 = vadd.f32 %v1243_v0, %v1541_v19  ;;  %v1261_v5 = vpop.f32.mrb[6].mxu1  ;;  %v593_v6 = vpop.f32.mrb[7].mxu0  ;;  %v890_v27 = vsel %vm793_vm2, %v599_v55, 0.0 }
  0xf8   : > { %816 = vst.msk [vmem:[%s1560_s18 + $0x30] sm:$0xff] %vm793_vm2, %v755_v61  ;;  %798 = vst.msk [vmem:[%s1553_s16 + $0x20] sm:$0xff] %vm793_vm2, %v591_v62  ;;  %v886_v8 = vsel %vm793_vm2, %v591_v62, 0.0  ;;  %v922_v9 = vadd.f32 %v921_v1, %v920_v60  ;;  %v758_v10 = vadd.f32 %v1261_v5, %v1547_v21  ;;  %v749_v11 = vpop.f32.mrb[7].mxu1  ;;  %v594_v14 = vadd.f32 %v1541_v19, %v593_v6 }
  0xf9   : > { %v887_v12 = vadd.f32 %v886_v8, %v885_v2  ;;  %814 = vst.msk [vmem:[%s1560_s18 + $0x20] sm:$0xff] %vm793_vm2, %v747_v3  ;;  %v923_v13 = vsel %vm793_vm2, %v747_v3, 0.0  ;;  %801 = vst.msk [vmem:[%s1553_s16 + $0x38] sm:$0xff] %vm793_vm2, %v602_v4  ;;  %v750_v18 = vadd.f32 %v1547_v21, %v749_v11  ;;  %v927_v33 = vsel %vm793_vm2, %v755_v61, 0.0 }
  0xfa   : > { %v924_v17 = vadd.f32 %v923_v13, %v922_v9  ;;  %817 = vst.msk [vmem:[%s1560_s18 + $0x38] sm:$0xff] %vm793_vm2, %v758_v10  ;;  %799 = vst.msk [vmem:[%s1553_s16 + $0x28] sm:$0xff] %vm793_vm2, %v594_v14  ;;  %v888_v22 = vsel %vm793_vm2, %v594_v14, 0.0  ;;  %v892_v39 = vsel %vm793_vm2, %v602_v4, 0.0  ;;  %v929_v45 = vsel %vm793_vm2, %v758_v10, 0.0 }
  0xfb   : > { %v889_v23 = vadd.f32 %v888_v22, %v887_v12  ;;  %815 = vst.msk [vmem:[%s1560_s18 + $0x28] sm:$0xff] %vm793_vm2, %v750_v18  ;;  %v925_v24 = vsel %vm793_vm2, %v750_v18, 0.0  ;;  %v873_v2 = vrot.slane %v872_v53, 4 }
  0xfc   : > { %v1246_v25 = vpop.f32.mrb[8].mxu0  ;;  %v926_v28 = vadd.f32 %v925_v24, %v924_v17 }
  0xfd   : > { %v615_v29 = vadd.f32 %v1246_v25, %v1541_v19  ;;  %v1264_v30 = vpop.f32.mrb[8].mxu1  ;;  %v606_v31 = vpop.f32.mrb[9].mxu0  ;;  %v891_v34 = vadd.f32 %v890_v27, %v889_v23  ;;  %v874_v26 = vadd.f32 %v873_v2, %v872_v53 }
  0xfe   : > { %v771_v35 = vadd.f32 %v1264_v30, %v1547_v21  ;;  %v607_v36 = vadd.f32 %v1541_v19, %v606_v31  ;;  %v762_v37 = vpop.f32.mrb[9].mxu1  ;;  %v1247_v38 = vpop.f32.mrb[10].mxu0  ;;  %v928_v40 = vadd.f32 %v927_v33, %v926_v28 }
  0xff   : > { %804 = vst.msk [vmem:[%s1553_s16 + $0x50] sm:$0xff] %vm793_vm2, %v615_v29  ;;  %v763_v41 = vadd.f32 %v1547_v21, %v762_v37  ;;  %v618_v42 = vadd.f32 %v1247_v38, %v1541_v19  ;;  %v1265_v43 = vpop.f32.mrb[10].mxu1  ;;  %v609_v44 = vpop.f32.mrb[11].mxu0  ;;  %v893_v46 = vadd.f32 %v892_v39, %v891_v34  ;;  %v898_v61 = vsel %vm793_vm2, %v615_v29, 0.0 }
 0x100   : > { %820 = vst.msk [vmem:[%s1560_s18 + $0x50] sm:$0xff] %vm793_vm2, %v771_v35  ;;  %802 = vst.msk [vmem:[%s1553_s16 + $0x40] sm:$0xff] %vm793_vm2, %v607_v36  ;;  %v894_v47 = vsel %vm793_vm2, %v607_v36, 0.0  ;;  %v774_v48 = vadd.f32 %v1265_v43, %v1547_v21  ;;  %v765_v49 = vpop.f32.mrb[11].mxu1  ;;  %v930_v50 = vadd.f32 %v929_v45, %v928_v40  ;;  %v610_v52 = vadd.f32 %v1541_v19, %v609_v44 }
 0x101   : > { %818 = vst.msk [vmem:[%s1560_s18 + $0x40] sm:$0xff] %vm793_vm2, %v763_v41  ;;  %v931_v51 = vsel %vm793_vm2, %v763_v41, 0.0  ;;  %805 = vst.msk [vmem:[%s1553_s16 + $0x58] sm:$0xff] %vm793_vm2, %v618_v42  ;;  %v895_v54 = vadd.f32 %v894_v47, %v893_v46  ;;  %v766_v55 = vadd.f32 %v1547_v21, %v765_v49  ;;  %v935_v3 = vsel %vm793_vm2, %v771_v35, 0.0 }
 0x102   : > { %821 = vst.msk [vmem:[%s1560_s18 + $0x58] sm:$0xff] %vm793_vm2, %v774_v48  ;;  %v932_v56 = vadd.f32 %v931_v51, %v930_v50  ;;  %803 = vst.msk [vmem:[%s1553_s16 + $0x48] sm:$0xff] %vm793_vm2, %v610_v52  ;;  %v896_v57 = vsel %vm793_vm2, %v610_v52, 0.0  ;;  %v900_v9 = vsel %vm793_vm2, %v618_v42, 0.0  ;;  %v937_v15 = vsel %vm793_vm2, %v774_v48, 0.0 }
 0x103   : > { %v897_v58 = vadd.f32 %v896_v57, %v895_v54  ;;  %819 = vst.msk [vmem:[%s1560_s18 + $0x48] sm:$0xff] %vm793_vm2, %v766_v55  ;;  %v933_v59 = vsel %vm793_vm2, %v766_v55, 0.0  ;;  %v875_v34 = vrot.slane %v874_v26, 2  ;;  %v1353_v57 = vmov (!%p1213_p7), 0.0  }
 0x104   : > { %v1250_v60 = vpop.f32.mrb[12].mxu0  ;;  %v934_v62 = vadd.f32 %v933_v59, %v932_v56  ;;  %962 = vst.msk [vmem:[%s1446_s26] sm:$0x7] (!%p1213_p7), %vm961_vm5, %v1353_v57 }
 0x105   : > { %v631_v63 = vadd.f32 %v1250_v60, %v1541_v19  ;;  %v1268_v0 = vpop.f32.mrb[12].mxu1  ;;  %v622_v1 = vpop.f32.mrb[13].mxu0  ;;  %v899_v4 = vadd.f32 %v898_v61, %v897_v58  ;;  %v876_v40 = vadd.f32 %v875_v34, %v874_v26 }
 0x106   : > { %v787_v5 = vadd.f32 %v1268_v0, %v1547_v21  ;;  %v623_v6 = vadd.f32 %v1541_v19, %v622_v1  ;;  %v778_v7 = vpop.f32.mrb[13].mxu1  ;;  %v1251_v8 = vpop.f32.mrb[14].mxu0  ;;  %v936_v10 = vadd.f32 %v935_v3, %v934_v62 }
 0x107   : > { %808 = vst.msk [vmem:[%s1553_s16 + $0x70] sm:$0xff] %vm793_vm2, %v631_v63  ;;  %v779_v11 = vadd.f32 %v1547_v21, %v778_v7  ;;  %v634_v12 = vadd.f32 %v1251_v8, %v1541_v19  ;;  %v1269_v13 = vpop.f32.mrb[14].mxu1  ;;  %v625_v14 = vpop.f32.mrb[15].mxu0  ;;  %v901_v16 = vadd.f32 %v900_v9, %v899_v4  ;;  %v906_v32 = vsel %vm793_vm2, %v631_v63, 0.0 }
 0x108   : > { %824 = vst.msk [vmem:[%s1560_s18 + $0x70] sm:$0xff] %vm793_vm2, %v787_v5  ;;  %806 = vst.msk [vmem:[%s1553_s16 + $0x60] sm:$0xff] %vm793_vm2, %v623_v6  ;;  %v902_v17 = vsel %vm793_vm2, %v623_v6, 0.0  ;;  %v790_v18 = vadd.f32 %v1269_v13, %v1547_v21  ;;  %v781_v20 = vpop.f32.mrb[15].mxu1  ;;  %v938_v22 = vadd.f32 %v937_v15, %v936_v10  ;;  %v626_v24 = vadd.f32 %v1541_v19, %v625_v14 }
 0x109   : > { %822 = vst.msk [vmem:[%s1560_s18 + $0x60] sm:$0xff] %vm793_vm2, %v779_v11  ;;  %v939_v23 = vsel %vm793_vm2, %v779_v11, 0.0  ;;  %809 = vst.msk [vmem:[%s1553_s16 + $0x78] sm:$0xff] %vm793_vm2, %v634_v12  ;;  %v903_v25 = vadd.f32 %v902_v17, %v901_v16  ;;  %v782_v27 = vadd.f32 %v1547_v21, %v781_v20  ;;  %v943_v19 = vsel %vm793_vm2, %v787_v5, 0.0 }
 0x10a   : > { %825 = vst.msk [vmem:[%s1560_s18 + $0x78] sm:$0xff] %vm793_vm2, %v790_v18  ;;  %v940_v28 = vadd.f32 %v939_v23, %v938_v22  ;;  %807 = vst.msk [vmem:[%s1553_s16 + $0x68] sm:$0xff] %vm793_vm2, %v626_v24  ;;  %v904_v29 = vsel %vm793_vm2, %v626_v24, 0.0  ;;  %v908_v36 = vsel %vm793_vm2, %v634_v12, 0.0  ;;  %v945_v37 = vsel %vm793_vm2, %v790_v18, 0.0 }
 0x10b   : > { %v905_v30 = vadd.f32 %v904_v29, %v903_v25  ;;  %823 = vst.msk [vmem:[%s1560_s18 + $0x68] sm:$0xff] %vm793_vm2, %v782_v27  ;;  %v941_v31 = vsel %vm793_vm2, %v782_v27, 0.0  ;;  %v877_v45 = vrot.slane %v876_v40, 1 }
 0x10c   : > { %v942_v33 = vadd.f32 %v941_v31, %v940_v28 }
 0x10d   : > { %v907_v35 = vadd.f32 %v906_v32, %v905_v30  ;;  %v878_v50 = vadd.f32 %v877_v45, %v876_v40 }
 0x10e   : > { %v944_v21 = vadd.f32 %v943_v19, %v942_v33 }
 0x10f   : > { %v909_v38 = vadd.f32 %v908_v36, %v907_v35 }
 0x110   : > { %v946_v39 = vadd.f32 %v945_v37, %v944_v21 }
 0x111   : > { %v910_v41 = vrot.slane %v909_v38, 4 }
 0x112   : > { %v947_v42 = vrot.slane %v946_v39, 4 }
 0x113   : > { %v911_v43 = vadd.f32 %v910_v41, %v909_v38 }
 0x114   : > { %v948_v44 = vadd.f32 %v947_v42, %v946_v39 }
 0x115   : > { %v912_v46 = vrot.slane %v911_v43, 2 }
 0x116   : > { %v949_v47 = vrot.slane %v948_v44, 2 }
 0x117   : > { %v913_v48 = vadd.f32 %v912_v46, %v911_v43 }
 0x118   : > { %v950_v49 = vadd.f32 %v949_v47, %v948_v44  ;;  %960 = sbr.rel (%p1213_p7) target bundleno = 287 (0x11f), region = 52 }
 0x119   : > { %v914_v51 = vrot.slane %v913_v48, 1 }
 0x11a   : > { %v951_v52 = vrot.slane %v950_v49, 1 }
 0x11b   : > { %v915_v53 = vadd.f32 %v914_v51, %v913_v48 }
 0x11c   : > { %v952_v54 = vadd.f32 %v951_v52, %v950_v49 }
 0x11d   : > { %v954_v55 = vsel %vm953_vm3, %v878_v50, %v915_v53 }
 0x11e   : > { %v956_v56 = vsel %vm955_vm4, %v954_v55, %v952_v54 }
 0x11f PF: > { %v963_v58 = vld [vmem:[%s1446_s26] sm:$0x7]  ;;  %vm965_vm6 = vcmask 124928  }
 0x120   : > { %v964_v59 = vadd.f32 %v963_v58, %v956_v56 }
 0x122   : > { %966 = vst.msk [vmem:[%s1446_s26] sm:$0x7] %vm965_vm6, %v964_v59 }
 0x123 PF: > { %s20_s13 = sadd.s32 1, %s1351_s13   ;;  %s1727_s30 = smov %s1343_s11 }
 0x124   : > { %p17_p8 = scmp.ge.s32.totalorder %s20_s13, 6   ;;  %s1728_s10 = smov %s1347_s12 }
 0x125   : > { %s1729_s11 = smov %s1732_s14  ;;  %s1730_s12 = smov %s1736_s15 }
 0x126   :  { %19 = sbr.rel (!%p17_p8) target bundleno = 3 (0x3), region = 112 }

</bundles_post_ra>
